<compile_context>
chip_gen: v7x
topology: tpu7x:2x2x1
jax: 0.10.0
libtpu: 0.0.40
codegen_flags: <defaults>
</compile_context>

<pallas_src>
import jax
import jax.numpy as jnp
from jax.experimental import pallas as pl
from jax.experimental.pallas import tpu as pltpu


# --------------------------------------------------------------------------- #
# Kernel
# --------------------------------------------------------------------------- #
def hgcn_kernel(h_ref, w_in_ref, w_out_ref, eb_in_ref, eb_out_ref,
                gw_ref, gb_ref, o_ref):
    """One batch tile (TB graphs) of the HierarchyGCN forward.

    h_ref      : (TB, N, D)  node features, original (batch, node, feature) layout
    w_in_ref   : (N, N)      origin_adj   * adj_matrix       (bottom-up)
    w_out_ref  : (N, N)      origin_adj.T * out_adj_matrix   (top-down)
    eb_in_ref  : (N, D)      edge_bias        (f32, broadcast over the batch tile)
    eb_out_ref : (N, D)      out_edge_bias
    gw_ref     : (D, 3)      [gate_weight | out_gate_weight | loop_gate]
    gb_ref     : (N, 3)      [bias_gate   | out_bias_gate   | 0]          (f32)
    o_ref      : (TB, N, D)  relu(in_ + out_ + loop_)
    """
    tb, n, d = h_ref.shape
    f32 = jnp.float32
    cdt = w_in_ref.dtype                   # MXU operand dtype (bf16 or f32)

    h3 = h_ref[...]                        # (TB, N, D), input dtype
    hc = h3.astype(cdt)                    # MXU operand copy

    # Lane-dense slab (N, TB*D) built in VMEM: one wide MXU matmul per
    # adjacency direction instead of TB narrow (N, N) @ (N, D) matmuls, and no
    # HBM round-trip for layout transposes in the wrapper.
    slab = jnp.concatenate([hc[t] for t in range(tb)], axis=1)           # (N, TB*D)
    msg_in = jnp.dot(w_in_ref[...], slab, preferred_element_type=f32)    # (N, TB*D) f32
    msg_out = jnp.dot(w_out_ref[...], slab, preferred_element_type=f32)  # (N, TB*D) f32

    eb_in = eb_in_ref[...]                 # (N, D) f32
    eb_out = eb_out_ref[...]               # (N, D) f32
    gw = gw_ref[...]                       # (D, 3) compute dtype
    gb = gb_ref[...]                       # (N, 3) f32

    # Static unroll over the (small) batch tile.
    for t in range(tb):
        # Thin gate logits: 3 logits / 3 sigmoids per node (not 3*D), then a
        # free VPU lane-broadcast across the D feature lanes.
        logits = jnp.dot(hc[t], gw, preferred_element_type=f32) + gb     # (N, 3) f32
        sig = jax.nn.sigmoid(logits)                                     # (N, 3) f32

        cols = slice(t * d, (t + 1) * d)   # 128-aligned when D % 128 == 0
        in_t = (msg_in[:, cols] + eb_in) * sig[:, 0:1]
        out_t = (msg_out[:, cols] + eb_out) * sig[:, 1:2]
        loop_t = h3[t].astype(f32) * sig[:, 2:3]

        o_ref[t] = jnp.maximum(in_t + out_t + loop_t, 0.0).astype(o_ref.dtype)


# --------------------------------------------------------------------------- #
# Tile selection / VMEM budgeting
# --------------------------------------------------------------------------- #
def _step_vmem_bytes(tb, n, d, h_bytes, w_bytes, out_bytes):
    """Rough per-grid-step VMEM footprint (blocks + live f32 temporaries)."""
    tbd = tb * d
    total = 2 * tb * n * d * h_bytes          # h block (double-buffered)
    total += 2 * tb * n * d * out_bytes       # output block (double-buffered)
    total += 2 * n * n * w_bytes              # w_in + w_out (single-buffered)
    total += 2 * n * d * 4                    # edge biases (single-buffered, f32)
    total += (d + n) * 128 * 4                # gate weights / biases (lane-padded)
    total += 6 * n * tbd * 4                  # slab + msg_in + msg_out + temps (f32)
    return total


def _pick_batch_tile(B, N, D, h_bytes, w_bytes, out_bytes, vmem_budget=28 << 20):
    """Largest batch tile TB (divisor of B) that fits the VMEM budget, preferring
    lane-dense TB*D (multiple of 128, ideally 256 for the v6e/v7x 256-wide MXU)
    and >= 2 (even) grid steps so both v7x TensorCores get balanced work."""
    best_tb, best_key = 1, None
    for tb in range(1, B + 1):
        if B % tb:
            continue
        if tb > 1 and _step_vmem_bytes(tb, N, D, h_bytes, w_bytes, out_bytes) > vmem_budget:
            continue
        tbd = tb * D
        steps = B // tb
        key = (
            tbd % 128 == 0,                    # lane-dense tiles / stores
            tbd % 256 == 0,                    # full v6e/v7x MXU lane width
            steps >= 2,                        # keep both v7x TCs busy
            steps % 2 == 0 or steps == 1,      # balanced 2-TC sharding
            tbd,                               # then: biggest tile
        )
        if best_key is None or key > best_key:
            best_tb, best_key = tb, key
    return best_tb


# --------------------------------------------------------------------------- #
# Parameter preparation (done ONCE, outside the per-step forward)
# --------------------------------------------------------------------------- #
def prepare_params(params, compute_dtype=jnp.bfloat16):
    """Fold origin_adj into the adjacency weights and pack the gate params.
    Call once; reuse the result across forward calls (no per-call XLA glue)."""
    f32 = jnp.float32
    origin_adj = jnp.where(params["in_adj"] <= 0, params["in_adj"], 1.0)
    w_in = (origin_adj * params["adj_matrix"]).astype(compute_dtype)       # (N, N)
    w_out = (origin_adj.T * params["out_adj_matrix"]).astype(compute_dtype)  # (N, N)
    gate_w = jnp.concatenate(
        [params["gate_weight"], params["out_gate_weight"], params["loop_gate"]],
        axis=1).astype(compute_dtype)                                      # (D, 3)
    gate_b = jnp.concatenate(
        [params["bias_gate"], params["out_bias_gate"],
         jnp.zeros_like(params["bias_gate"])], axis=1).astype(f32)         # (N, 3)
    return {
        "w_in": w_in,
        "w_out": w_out,
        "edge_bias": params["edge_bias"].astype(f32),
        "out_edge_bias": params["out_edge_bias"].astype(f32),
        "gate_w": gate_w,
        "gate_b": gate_b,
    }


# --------------------------------------------------------------------------- #
# Forward wrapper (no XLA side-ops: it is exactly one pallas_call)
# --------------------------------------------------------------------------- #
def hierarchy_gcn_forward(h, prepared, *, batch_tile=None):
    """h: (B, N, D).  prepared: output of prepare_params().  Returns (B, N, D)."""
    B, N, D = h.shape
    h_bytes = h.dtype.itemsize
    w_bytes = prepared["w_in"].dtype.itemsize
    out_bytes = h.dtype.itemsize

    TB = batch_tile if batch_tile is not None else _pick_batch_tile(
        B, N, D, h_bytes, w_bytes, out_bytes)
    assert B % TB == 0, "batch tile must divide the batch"
    grid = (B // TB,)

    step_bytes = _step_vmem_bytes(TB, N, D, h_bytes, w_bytes, out_bytes)
    vmem_limit = int(min(64 << 20, max(24 << 20, 2 * step_bytes)))

    inv = dict(pipeline_mode=pl.Buffered(1))   # grid-invariant: single-buffer

    return pl.pallas_call(
        hgcn_kernel,
        out_shape=jax.ShapeDtypeStruct((B, N, D), h.dtype),
        grid_spec=pltpu.PrefetchScalarGridSpec(
            num_scalar_prefetch=0,
            grid=grid,
            in_specs=[
                pl.BlockSpec((TB, N, D), lambda bt: (bt, 0, 0)),            # h tile
                pl.BlockSpec((N, N), lambda bt: (0, 0), **inv),             # W_in
                pl.BlockSpec((N, N), lambda bt: (0, 0), **inv),             # W_out
                pl.BlockSpec((N, D), lambda bt: (0, 0), **inv),             # edge_bias
                pl.BlockSpec((N, D), lambda bt: (0, 0), **inv),             # out_edge_bias
                pl.BlockSpec((D, 3), lambda bt: (0, 0), **inv),             # gate weights
                pl.BlockSpec((N, 3), lambda bt: (0, 0), **inv),             # gate biases
            ],
            out_specs=pl.BlockSpec((TB, N, D), lambda bt: (bt, 0, 0)),
        ),
        compiler_params=pltpu.CompilerParams(
            dimension_semantics=("parallel",),
            vmem_limit_bytes=vmem_limit,
        ),
    )(h, prepared["w_in"], prepared["w_out"], prepared["edge_bias"],
      prepared["out_edge_bias"], prepared["gate_w"], prepared["gate_b"])


# --------------------------------------------------------------------------- #
# Pure-JAX reference (HierarchyGCNModule.forward, dropout=0, eval)
# --------------------------------------------------------------------------- #
def reference_forward(h, params, compute_dtype=jnp.float32):
    """Module semantics; casts only the matmul operands through compute_dtype
    (matches the kernel's 'bf16 MXU operands, f32 everything else' policy)."""
    f32 = jnp.float32
    cast = lambda x: x.astype(compute_dtype).astype(f32)

    origin_adj = jnp.where(params["in_adj"] <= 0, params["in_adj"], 1.0)
    w_in = cast(origin_adj * params["adj_matrix"])
    w_out = cast(origin_adj.T * params["out_adj_matrix"])
    hc = cast(h)
    gw = cast(params["gate_weight"])
    ogw = cast(params["out_gate_weight"])
    lg = cast(params["loop_gate"])

    in_ = jnp.einsum("nm,bmd->bnd", w_in, hc) + params["edge_bias"]
    in_gate = jnp.einsum("bnd,do->bno", hc, gw) + params["bias_gate"]
    message = in_ * jax.nn.sigmoid(in_gate)

    out_ = jnp.einsum("nm,bmd->bnd", w_out, hc) + params["out_edge_bias"]
    out_gate = jnp.einsum("bnd,do->bno", hc, ogw) + params["out_bias_gate"]
    message = message + out_ * jax.nn.sigmoid(out_gate)

    loop_gate = jnp.einsum("bnd,do->bno", hc, lg)
    message = message + h * jax.nn.sigmoid(loop_gate)   # self-loop uses original h
    return jnp.maximum(message, 0.0)


# --------------------------------------------------------------------------- #
# Parameter init (mirrors HierarchyGCNModule.__init__ / reset_parameters)
# --------------------------------------------------------------------------- #
def init_params(key, num_nodes, in_dim):
    keys = jax.random.split(key, 9)
    N, D = num_nodes, in_dim

    # synthetic hierarchy probability matrices (role of in_adj / out_adj)
    in_adj = jax.random.uniform(keys[0], (N, N), jnp.float32)
    in_adj = jnp.where(in_adj > 0.6, in_adj, 0.0)
    out_adj = jax.random.uniform(keys[1], (N, N), jnp.float32)
    out_adj = jnp.where(out_adj > 0.6, out_adj, 0.0)

    def xavier(k, shape):                       # xavier_uniform_ for (D, 1)
        bound = (6.0 / (shape[0] + shape[1])) ** 0.5
        return jax.random.uniform(k, shape, jnp.float32, -bound, bound)

    # NOTE: torch zero-initializes the edge/gate biases (and out_bias_gate is
    # uninitialized).  Small random values are used here so the test exercises
    # the kernel's bias paths; semantics are unchanged.
    return {
        "in_adj": in_adj,
        "adj_matrix": in_adj,                   # Parameter(torch.Tensor(in_prob))
        "out_adj_matrix": out_adj,
        "edge_bias": 0.1 * jax.random.normal(keys[2], (N, D), jnp.float32),
        "out_edge_bias": 0.1 * jax.random.normal(keys[3], (N, D), jnp.float32),
        "bias_gate": 0.1 * jax.random.normal(keys[4], (N, 1), jnp.float32),
        "out_bias_gate": 0.1 * jax.random.normal(keys[5], (N, 1), jnp.float32),
        "gate_weight": xavier(keys[6], (D, 1)),
        "out_gate_weight": xavier(keys[7], (D, 1)),
        "loop_gate": xavier(keys[8], (D, 1)),
    }


if __name__ == "__main__":
    # Small but lane-friendly shapes: 8 graphs, 16 hierarchy nodes, 128-dim node
    # features.  D % 128 == 0 keeps every in-kernel lane slice tile-aligned;
    # the tile picker chooses TB=4 -> TB*D = 512 lanes, grid = (2,) (balanced
    # across v7x's two TensorCores).
    B, N, D = 8, 16, 128
    key = jax.random.PRNGKey(0)
    k_param, k_input = jax.random.split(key)

    params = init_params(k_param, N, D)
    h = jax.random.normal(k_input, (B, N, D), jnp.float32)

    # --- f32 MXU-operand path: exact module semantics ----------------------
    prep_f32 = prepare_params(params, compute_dtype=jnp.float32)
    out_f32 = jax.block_until_ready(hierarchy_gcn_forward(h, prep_f32))
    ref_f32 = reference_forward(h, params, compute_dtype=jnp.float32)
    assert out_f32.shape == (B, N, D)
    assert jnp.allclose(out_f32, ref_f32, atol=1e-3, rtol=1e-3), "f32 mismatch vs reference"

    # --- default bf16 MXU-operand path (halved weight HBM/VMEM bytes) ------
    prep_bf16 = prepare_params(params)          # compute_dtype defaults to bf16
    out_bf16 = jax.block_until_ready(hierarchy_gcn_forward(h, prep_bf16))
    ref_bf16 = reference_forward(h, params, compute_dtype=jnp.bfloat16)
    assert jnp.allclose(out_bf16, ref_bf16, atol=5e-3, rtol=5e-3), "bf16 mismatch vs bf16 reference"
    assert jnp.allclose(out_bf16, ref_f32, atol=1e-1, rtol=1e-1), "bf16 drift vs f32 semantics"

    print("KERNEL_OK")
</pallas_src>

<mosaic_0001>
module attributes {stable_mosaic.version = 11 : i64} {
  func.func @hgcn_kernel(%arg0: i32, %arg1: memref<4x16x128xf32, #tpu.memory_space<vmem>>, %arg2: memref<16x16xf32, #tpu.memory_space<vmem>>, %arg3: memref<16x16xf32, #tpu.memory_space<vmem>>, %arg4: memref<16x128xf32, #tpu.memory_space<vmem>>, %arg5: memref<16x128xf32, #tpu.memory_space<vmem>>, %arg6: memref<128x3xf32, #tpu.memory_space<vmem>>, %arg7: memref<16x3xf32, #tpu.memory_space<vmem>>, %arg8: memref<4x16x128xf32, #tpu.memory_space<vmem>>) attributes {dimension_semantics = [#tpu.dimension_semantics<parallel>], iteration_bounds = array<i64: 2>, scalar_prefetch = 0 : i64, scratch_operands = 0 : i64, tpu.core_type = #tpu.core_type<tc>, window_params = [{transform_indices = @transform_0, window_bounds = array<i64: 4, 16, 128>}, {pipeline_mode = #tpu.pipeline_mode<synchronous>, transform_indices = @transform_1, window_bounds = array<i64: 16, 16>}, {pipeline_mode = #tpu.pipeline_mode<synchronous>, transform_indices = @transform_2, window_bounds = array<i64: 16, 16>}, {pipeline_mode = #tpu.pipeline_mode<synchronous>, transform_indices = @transform_3, window_bounds = array<i64: 16, 128>}, {pipeline_mode = #tpu.pipeline_mode<synchronous>, transform_indices = @transform_4, window_bounds = array<i64: 16, 128>}, {pipeline_mode = #tpu.pipeline_mode<synchronous>, transform_indices = @transform_5, window_bounds = array<i64: 128, 3>}, {pipeline_mode = #tpu.pipeline_mode<synchronous>, transform_indices = @transform_6, window_bounds = array<i64: 16, 3>}, {transform_indices = @transform_7, window_bounds = array<i64: 4, 16, 128>}]} {
    %c0 = arith.constant 0 : index
    %c0_0 = arith.constant 0 : index
    %c0_1 = arith.constant 0 : index
    %0 = vector.load %arg1[%c0, %c0_0, %c0_1] : memref<4x16x128xf32, #tpu.memory_space<vmem>>, vector<4x16x128xf32>
    %1 = vector.extract_strided_slice %0 {offsets = [0, 0, 0], sizes = [1, 16, 128], strides = [1, 1, 1]} : vector<4x16x128xf32> to vector<1x16x128xf32>
    %2 = vector.shape_cast %1 : vector<1x16x128xf32> to vector<16x128xf32>
    %3 = vector.extract_strided_slice %0 {offsets = [1, 0, 0], sizes = [1, 16, 128], strides = [1, 1, 1]} : vector<4x16x128xf32> to vector<1x16x128xf32>
    %4 = vector.shape_cast %3 : vector<1x16x128xf32> to vector<16x128xf32>
    %5 = vector.extract_strided_slice %0 {offsets = [2, 0, 0], sizes = [1, 16, 128], strides = [1, 1, 1]} : vector<4x16x128xf32> to vector<1x16x128xf32>
    %6 = vector.shape_cast %5 : vector<1x16x128xf32> to vector<16x128xf32>
    %7 = vector.extract_strided_slice %0 {offsets = [3, 0, 0], sizes = [1, 16, 128], strides = [1, 1, 1]} : vector<4x16x128xf32> to vector<1x16x128xf32>
    %8 = vector.shape_cast %7 : vector<1x16x128xf32> to vector<16x128xf32>
    %9 = tpu.concatenate %2, %4, %6, %8 in 1 : vector<16x128xf32>, vector<16x128xf32>, vector<16x128xf32>, vector<16x128xf32> -> vector<16x512xf32>
    %c0_2 = arith.constant 0 : index
    %c0_3 = arith.constant 0 : index
    %10 = vector.load %arg2[%c0_2, %c0_3] : memref<16x16xf32, #tpu.memory_space<vmem>>, vector<16x16xf32>
    %cst = arith.constant dense<0.000000e+00> : vector<16x512xf32>
    %11 = tpu.matmul %10, %9, %cst {dimension_numbers = #tpu.dot_dimension_numbers<[1], [0], [0], [1], [0, 0, 1, 1], [], []>} : vector<16x16xf32>, vector<16x512xf32>, vector<16x512xf32> -> vector<16x512xf32>
    %c0_4 = arith.constant 0 : index
    %c0_5 = arith.constant 0 : index
    %12 = vector.load %arg3[%c0_4, %c0_5] : memref<16x16xf32, #tpu.memory_space<vmem>>, vector<16x16xf32>
    %cst_6 = arith.constant dense<0.000000e+00> : vector<16x512xf32>
    %13 = tpu.matmul %12, %9, %cst_6 {dimension_numbers = #tpu.dot_dimension_numbers<[1], [0], [0], [1], [0, 0, 1, 1], [], []>} : vector<16x16xf32>, vector<16x512xf32>, vector<16x512xf32> -> vector<16x512xf32>
    %c0_7 = arith.constant 0 : index
    %c0_8 = arith.constant 0 : index
    %14 = vector.load %arg4[%c0_7, %c0_8] : memref<16x128xf32, #tpu.memory_space<vmem>>, vector<16x128xf32>
    %c0_9 = arith.constant 0 : index
    %c0_10 = arith.constant 0 : index
    %15 = vector.load %arg5[%c0_9, %c0_10] : memref<16x128xf32, #tpu.memory_space<vmem>>, vector<16x128xf32>
    %c0_11 = arith.constant 0 : index
    %c0_12 = arith.constant 0 : index
    %16 = vector.load %arg6[%c0_11, %c0_12] : memref<128x3xf32, #tpu.memory_space<vmem>>, vector<128x3xf32>
    %c0_13 = arith.constant 0 : index
    %c0_14 = arith.constant 0 : index
    %17 = vector.load %arg7[%c0_13, %c0_14] : memref<16x3xf32, #tpu.memory_space<vmem>>, vector<16x3xf32>
    %18 = vector.extract_strided_slice %0 {offsets = [0, 0, 0], sizes = [1, 16, 128], strides = [1, 1, 1]} : vector<4x16x128xf32> to vector<1x16x128xf32>
    %19 = vector.shape_cast %18 : vector<1x16x128xf32> to vector<16x128xf32>
    %cst_15 = arith.constant dense<0.000000e+00> : vector<16x3xf32>
    %20 = tpu.matmul %19, %16, %cst_15 {dimension_numbers = #tpu.dot_dimension_numbers<[1], [0], [0], [1], [0, 0, 1, 1], [], []>} : vector<16x128xf32>, vector<128x3xf32>, vector<16x3xf32> -> vector<16x3xf32>
    %21 = arith.addf %20, %17 : vector<16x3xf32>
    %22 = arith.negf %21 : vector<16x3xf32>
    %23 = math.exp %22 : vector<16x3xf32>
    %cst_16 = arith.constant 1.000000e+00 : f32
    %24 = vector.broadcast %cst_16 : f32 to vector<16x3xf32>
    %25 = arith.addf %24, %23 : vector<16x3xf32>
    %26 = arith.divf %24, %25 : vector<16x3xf32>
    %27 = vector.extract_strided_slice %11 {offsets = [0, 0], sizes = [16, 128], strides = [1, 1]} : vector<16x512xf32> to vector<16x128xf32>
    %28 = arith.addf %27, %14 : vector<16x128xf32>
    %29 = vector.extract_strided_slice %26 {offsets = [0, 0], sizes = [16, 1], strides = [1, 1]} : vector<16x3xf32> to vector<16x1xf32>
    %30 = vector.broadcast %29 : vector<16x1xf32> to vector<16x128xf32>
    %31 = arith.mulf %28, %30 : vector<16x128xf32>
    %32 = vector.extract_strided_slice %13 {offsets = [0, 0], sizes = [16, 128], strides = [1, 1]} : vector<16x512xf32> to vector<16x128xf32>
    %33 = arith.addf %32, %15 : vector<16x128xf32>
    %34 = vector.extract_strided_slice %26 {offsets = [0, 1], sizes = [16, 1], strides = [1, 1]} : vector<16x3xf32> to vector<16x1xf32>
    %35 = vector.broadcast %34 : vector<16x1xf32> to vector<16x128xf32>
    %36 = arith.mulf %33, %35 : vector<16x128xf32>
    %37 = vector.extract_strided_slice %0 {offsets = [0, 0, 0], sizes = [1, 16, 128], strides = [1, 1, 1]} : vector<4x16x128xf32> to vector<1x16x128xf32>
    %38 = vector.shape_cast %37 : vector<1x16x128xf32> to vector<16x128xf32>
    %39 = vector.extract_strided_slice %26 {offsets = [0, 2], sizes = [16, 1], strides = [1, 1]} : vector<16x3xf32> to vector<16x1xf32>
    %40 = vector.broadcast %39 : vector<16x1xf32> to vector<16x128xf32>
    %41 = arith.mulf %38, %40 : vector<16x128xf32>
    %42 = arith.addf %31, %36 : vector<16x128xf32>
    %43 = arith.addf %42, %41 : vector<16x128xf32>
    %cst_17 = arith.constant 0.000000e+00 : f32
    %44 = vector.broadcast %cst_17 : f32 to vector<16x128xf32>
    %45 = arith.maximumf %43, %44 : vector<16x128xf32>
    %c0_18 = arith.constant 0 : index
    %c0_19 = arith.constant 0 : index
    %c0_20 = arith.constant 0 : index
    %46 = vector.load %arg8[%c0_18, %c0_19, %c0_20] : memref<4x16x128xf32, #tpu.memory_space<vmem>>, vector<1x16x128xf32>
    %47 = vector.shape_cast %46 : vector<1x16x128xf32> to vector<16x128xf32>
    %48 = vector.shape_cast %45 : vector<16x128xf32> to vector<1x16x128xf32>
    tpu.vector_store %arg8[%c0_18, %c0_19, %c0_20], %48 {strides = array<i32>} : memref<4x16x128xf32, #tpu.memory_space<vmem>>, vector<1x16x128xf32>,
    %49 = vector.extract_strided_slice %0 {offsets = [1, 0, 0], sizes = [1, 16, 128], strides = [1, 1, 1]} : vector<4x16x128xf32> to vector<1x16x128xf32>
    %50 = vector.shape_cast %49 : vector<1x16x128xf32> to vector<16x128xf32>
    %cst_21 = arith.constant dense<0.000000e+00> : vector<16x3xf32>
    %51 = tpu.matmul %50, %16, %cst_21 {dimension_numbers = #tpu.dot_dimension_numbers<[1], [0], [0], [1], [0, 0, 1, 1], [], []>} : vector<16x128xf32>, vector<128x3xf32>, vector<16x3xf32> -> vector<16x3xf32>
    %52 = arith.addf %51, %17 : vector<16x3xf32>
    %53 = arith.negf %52 : vector<16x3xf32>
    %54 = math.exp %53 : vector<16x3xf32>
    %cst_22 = arith.constant 1.000000e+00 : f32
    %55 = vector.broadcast %cst_22 : f32 to vector<16x3xf32>
    %56 = arith.addf %55, %54 : vector<16x3xf32>
    %57 = arith.divf %55, %56 : vector<16x3xf32>
    %58 = vector.extract_strided_slice %11 {offsets = [0, 128], sizes = [16, 128], strides = [1, 1]} : vector<16x512xf32> to vector<16x128xf32>
    %59 = arith.addf %58, %14 : vector<16x128xf32>
    %60 = vector.extract_strided_slice %57 {offsets = [0, 0], sizes = [16, 1], strides = [1, 1]} : vector<16x3xf32> to vector<16x1xf32>
    %61 = vector.broadcast %60 : vector<16x1xf32> to vector<16x128xf32>
    %62 = arith.mulf %59, %61 : vector<16x128xf32>
    %63 = vector.extract_strided_slice %13 {offsets = [0, 128], sizes = [16, 128], strides = [1, 1]} : vector<16x512xf32> to vector<16x128xf32>
    %64 = arith.addf %63, %15 : vector<16x128xf32>
    %65 = vector.extract_strided_slice %57 {offsets = [0, 1], sizes = [16, 1], strides = [1, 1]} : vector<16x3xf32> to vector<16x1xf32>
    %66 = vector.broadcast %65 : vector<16x1xf32> to vector<16x128xf32>
    %67 = arith.mulf %64, %66 : vector<16x128xf32>
    %68 = vector.extract_strided_slice %0 {offsets = [1, 0, 0], sizes = [1, 16, 128], strides = [1, 1, 1]} : vector<4x16x128xf32> to vector<1x16x128xf32>
    %69 = vector.shape_cast %68 : vector<1x16x128xf32> to vector<16x128xf32>
    %70 = vector.extract_strided_slice %57 {offsets = [0, 2], sizes = [16, 1], strides = [1, 1]} : vector<16x3xf32> to vector<16x1xf32>
    %71 = vector.broadcast %70 : vector<16x1xf32> to vector<16x128xf32>
    %72 = arith.mulf %69, %71 : vector<16x128xf32>
    %73 = arith.addf %62, %67 : vector<16x128xf32>
    %74 = arith.addf %73, %72 : vector<16x128xf32>
    %cst_23 = arith.constant 0.000000e+00 : f32
    %75 = vector.broadcast %cst_23 : f32 to vector<16x128xf32>
    %76 = arith.maximumf %74, %75 : vector<16x128xf32>
    %c1 = arith.constant 1 : index
    %c0_24 = arith.constant 0 : index
    %c0_25 = arith.constant 0 : index
    %77 = vector.load %arg8[%c1, %c0_24, %c0_25] : memref<4x16x128xf32, #tpu.memory_space<vmem>>, vector<1x16x128xf32>
    %78 = vector.shape_cast %77 : vector<1x16x128xf32> to vector<16x128xf32>
    %79 = vector.shape_cast %76 : vector<16x128xf32> to vector<1x16x128xf32>
    tpu.vector_store %arg8[%c1, %c0_24, %c0_25], %79 {strides = array<i32>} : memref<4x16x128xf32, #tpu.memory_space<vmem>>, vector<1x16x128xf32>,
    %80 = vector.extract_strided_slice %0 {offsets = [2, 0, 0], sizes = [1, 16, 128], strides = [1, 1, 1]} : vector<4x16x128xf32> to vector<1x16x128xf32>
    %81 = vector.shape_cast %80 : vector<1x16x128xf32> to vector<16x128xf32>
    %cst_26 = arith.constant dense<0.000000e+00> : vector<16x3xf32>
    %82 = tpu.matmul %81, %16, %cst_26 {dimension_numbers = #tpu.dot_dimension_numbers<[1], [0], [0], [1], [0, 0, 1, 1], [], []>} : vector<16x128xf32>, vector<128x3xf32>, vector<16x3xf32> -> vector<16x3xf32>
    %83 = arith.addf %82, %17 : vector<16x3xf32>
    %84 = arith.negf %83 : vector<16x3xf32>
    %85 = math.exp %84 : vector<16x3xf32>
    %cst_27 = arith.constant 1.000000e+00 : f32
    %86 = vector.broadcast %cst_27 : f32 to vector<16x3xf32>
    %87 = arith.addf %86, %85 : vector<16x3xf32>
    %88 = arith.divf %86, %87 : vector<16x3xf32>
    %89 = vector.extract_strided_slice %11 {offsets = [0, 256], sizes = [16, 128], strides = [1, 1]} : vector<16x512xf32> to vector<16x128xf32>
    %90 = arith.addf %89, %14 : vector<16x128xf32>
    %91 = vector.extract_strided_slice %88 {offsets = [0, 0], sizes = [16, 1], strides = [1, 1]} : vector<16x3xf32> to vector<16x1xf32>
    %92 = vector.broadcast %91 : vector<16x1xf32> to vector<16x128xf32>
    %93 = arith.mulf %90, %92 : vector<16x128xf32>
    %94 = vector.extract_strided_slice %13 {offsets = [0, 256], sizes = [16, 128], strides = [1, 1]} : vector<16x512xf32> to vector<16x128xf32>
    %95 = arith.addf %94, %15 : vector<16x128xf32>
    %96 = vector.extract_strided_slice %88 {offsets = [0, 1], sizes = [16, 1], strides = [1, 1]} : vector<16x3xf32> to vector<16x1xf32>
    %97 = vector.broadcast %96 : vector<16x1xf32> to vector<16x128xf32>
    %98 = arith.mulf %95, %97 : vector<16x128xf32>
    %99 = vector.extract_strided_slice %0 {offsets = [2, 0, 0], sizes = [1, 16, 128], strides = [1, 1, 1]} : vector<4x16x128xf32> to vector<1x16x128xf32>
    %100 = vector.shape_cast %99 : vector<1x16x128xf32> to vector<16x128xf32>
    %101 = vector.extract_strided_slice %88 {offsets = [0, 2], sizes = [16, 1], strides = [1, 1]} : vector<16x3xf32> to vector<16x1xf32>
    %102 = vector.broadcast %101 : vector<16x1xf32> to vector<16x128xf32>
    %103 = arith.mulf %100, %102 : vector<16x128xf32>
    %104 = arith.addf %93, %98 : vector<16x128xf32>
    %105 = arith.addf %104, %103 : vector<16x128xf32>
    %cst_28 = arith.constant 0.000000e+00 : f32
    %106 = vector.broadcast %cst_28 : f32 to vector<16x128xf32>
    %107 = arith.maximumf %105, %106 : vector<16x128xf32>
    %c2 = arith.constant 2 : index
    %c0_29 = arith.constant 0 : index
    %c0_30 = arith.constant 0 : index
    %108 = vector.load %arg8[%c2, %c0_29, %c0_30] : memref<4x16x128xf32, #tpu.memory_space<vmem>>, vector<1x16x128xf32>
    %109 = vector.shape_cast %108 : vector<1x16x128xf32> to vector<16x128xf32>
    %110 = vector.shape_cast %107 : vector<16x128xf32> to vector<1x16x128xf32>
    tpu.vector_store %arg8[%c2, %c0_29, %c0_30], %110 {strides = array<i32>} : memref<4x16x128xf32, #tpu.memory_space<vmem>>, vector<1x16x128xf32>,
    %111 = vector.extract_strided_slice %0 {offsets = [3, 0, 0], sizes = [1, 16, 128], strides = [1, 1, 1]} : vector<4x16x128xf32> to vector<1x16x128xf32>
    %112 = vector.shape_cast %111 : vector<1x16x128xf32> to vector<16x128xf32>
    %cst_31 = arith.constant dense<0.000000e+00> : vector<16x3xf32>
    %113 = tpu.matmul %112, %16, %cst_31 {dimension_numbers = #tpu.dot_dimension_numbers<[1], [0], [0], [1], [0, 0, 1, 1], [], []>} : vector<16x128xf32>, vector<128x3xf32>, vector<16x3xf32> -> vector<16x3xf32>
    %114 = arith.addf %113, %17 : vector<16x3xf32>
    %115 = arith.negf %114 : vector<16x3xf32>
    %116 = math.exp %115 : vector<16x3xf32>
    %cst_32 = arith.constant 1.000000e+00 : f32
    %117 = vector.broadcast %cst_32 : f32 to vector<16x3xf32>
    %118 = arith.addf %117, %116 : vector<16x3xf32>
    %119 = arith.divf %117, %118 : vector<16x3xf32>
    %120 = vector.extract_strided_slice %11 {offsets = [0, 384], sizes = [16, 128], strides = [1, 1]} : vector<16x512xf32> to vector<16x128xf32>
    %121 = arith.addf %120, %14 : vector<16x128xf32>
    %122 = vector.extract_strided_slice %119 {offsets = [0, 0], sizes = [16, 1], strides = [1, 1]} : vector<16x3xf32> to vector<16x1xf32>
    %123 = vector.broadcast %122 : vector<16x1xf32> to vector<16x128xf32>
    %124 = arith.mulf %121, %123 : vector<16x128xf32>
    %125 = vector.extract_strided_slice %13 {offsets = [0, 384], sizes = [16, 128], strides = [1, 1]} : vector<16x512xf32> to vector<16x128xf32>
    %126 = arith.addf %125, %15 : vector<16x128xf32>
    %127 = vector.extract_strided_slice %119 {offsets = [0, 1], sizes = [16, 1], strides = [1, 1]} : vector<16x3xf32> to vector<16x1xf32>
    %128 = vector.broadcast %127 : vector<16x1xf32> to vector<16x128xf32>
    %129 = arith.mulf %126, %128 : vector<16x128xf32>
    %130 = vector.extract_strided_slice %0 {offsets = [3, 0, 0], sizes = [1, 16, 128], strides = [1, 1, 1]} : vector<4x16x128xf32> to vector<1x16x128xf32>
    %131 = vector.shape_cast %130 : vector<1x16x128xf32> to vector<16x128xf32>
    %132 = vector.extract_strided_slice %119 {offsets = [0, 2], sizes = [16, 1], strides = [1, 1]} : vector<16x3xf32> to vector<16x1xf32>
    %133 = vector.broadcast %132 : vector<16x1xf32> to vector<16x128xf32>
    %134 = arith.mulf %131, %133 : vector<16x128xf32>
    %135 = arith.addf %124, %129 : vector<16x128xf32>
    %136 = arith.addf %135, %134 : vector<16x128xf32>
    %cst_33 = arith.constant 0.000000e+00 : f32
    %137 = vector.broadcast %cst_33 : f32 to vector<16x128xf32>
    %138 = arith.maximumf %136, %137 : vector<16x128xf32>
    %c3 = arith.constant 3 : index
    %c0_34 = arith.constant 0 : index
    %c0_35 = arith.constant 0 : index
    %139 = vector.load %arg8[%c3, %c0_34, %c0_35] : memref<4x16x128xf32, #tpu.memory_space<vmem>>, vector<1x16x128xf32>
    %140 = vector.shape_cast %139 : vector<1x16x128xf32> to vector<16x128xf32>
    %141 = vector.shape_cast %138 : vector<16x128xf32> to vector<1x16x128xf32>
    tpu.vector_store %arg8[%c3, %c0_34, %c0_35], %141 {strides = array<i32>} : memref<4x16x128xf32, #tpu.memory_space<vmem>>, vector<1x16x128xf32>,
    return
  }
  func.func @transform_0(%arg0: i32) -> (i32, i32, i32) {
    %c0_i32 = arith.constant 0 : i32
    %c0_i32_0 = arith.constant 0 : i32
    %c0_i32_1 = arith.constant 0 : i32
    return %arg0, %c0_i32, %c0_i32_0 : i32, i32, i32
  }
  func.func @transform_1(%arg0: i32) -> (i32, i32) {
    %c0_i32 = arith.constant 0 : i32
    %c0_i32_0 = arith.constant 0 : i32
    %c0_i32_1 = arith.constant 0 : i32
    return %c0_i32, %c0_i32_0 : i32, i32
  }
  func.func @transform_2(%arg0: i32) -> (i32, i32) {
    %c0_i32 = arith.constant 0 : i32
    %c0_i32_0 = arith.constant 0 : i32
    %c0_i32_1 = arith.constant 0 : i32
    return %c0_i32, %c0_i32_0 : i32, i32
  }
  func.func @transform_3(%arg0: i32) -> (i32, i32) {
    %c0_i32 = arith.constant 0 : i32
    %c0_i32_0 = arith.constant 0 : i32
    %c0_i32_1 = arith.constant 0 : i32
    return %c0_i32, %c0_i32_0 : i32, i32
  }
  func.func @transform_4(%arg0: i32) -> (i32, i32) {
    %c0_i32 = arith.constant 0 : i32
    %c0_i32_0 = arith.constant 0 : i32
    %c0_i32_1 = arith.constant 0 : i32
    return %c0_i32, %c0_i32_0 : i32, i32
  }
  func.func @transform_5(%arg0: i32) -> (i32, i32) {
    %c0_i32 = arith.constant 0 : i32
    %c0_i32_0 = arith.constant 0 : i32
    %c0_i32_1 = arith.constant 0 : i32
    return %c0_i32, %c0_i32_0 : i32, i32
  }
  func.func @transform_6(%arg0: i32) -> (i32, i32) {
    %c0_i32 = arith.constant 0 : i32
    %c0_i32_0 = arith.constant 0 : i32
    %c0_i32_1 = arith.constant 0 : i32
    return %c0_i32, %c0_i32_0 : i32, i32
  }
  func.func @transform_7(%arg0: i32) -> (i32, i32, i32) {
    %c0_i32 = arith.constant 0 : i32
    %c0_i32_0 = arith.constant 0 : i32
    %c0_i32_1 = arith.constant 0 : i32
    return %arg0, %c0_i32, %c0_i32_0 : i32, i32, i32
  }
}

</mosaic_0001>

<bundles_post_ra>
// kernel: tpu_custom_call.1
= control target key start
LH: loop header
LB: loop body
LE: loop exit
PB: predicated region body
PF: predicated region fallthrough
CT: control target
= control target key end

     0   :  { %12 = vsyncpa [#allocation3], 0  ;;  %s2403_s0 = inlined_call_operand.vmem [shape: f32[8,16,128], index: 0, kind: input, shape index: {}]   ;;  %s2404_s1 = inlined_call_operand.vmem [shape: f32[16,16], index: 1, kind: input, shape index: {}]   ;;  %s2405_s2 = inlined_call_operand.hbm [shape: f32[16,16], index: 2, kind: input, shape index: {}]   ;;  %s2406_s3 = inlined_call_operand.vmem [shape: f32[16,128], index: 3, kind: input, shape index: {}]   ;;  %s2407_s4 = inlined_call_operand.hbm [shape: f32[16,128], index: 4, kind: input, shape index: {}]   ;;  %s2408_s5 = inlined_call_operand.vmem [shape: f32[128,3], index: 5, kind: input, shape index: {}]   ;;  %s2409_s6 = inlined_call_operand.vmem [shape: f32[16,3], index: 6, kind: input, shape index: {}]   ;;  %s2410_s7 = inlined_call_operand.hbm [shape: f32[8,16,128], index: 7, kind: output, shape index: {}]  }
   0x1   :  { %13 = vsyncpa [#allocation6], 0 }
   0x2   :  { %14 = vsyncpa [#allocation4], 0 }
   0x3   :  { %16 = vsyncpa [#allocation4 + $0x1], 0  ;;  %s1991_s24 = smov 0   ;;  %s1993_s25 = smov 0  }
   0x4   :  { %s1995_s26 = smov 0   ;;  %s1997_s27 = smov 0  }
   0x5 LB: > { %s2012_s28 = sadd.s32 4294967295, %s1938_s27   ;;  %s1294_s29 = sadd.s32 4294967294, %s1938_s27   ;;  %s1938_s27 = sphi %s1997_s27, %s2430_s27   ;;  %s1934_s26 = sphi %s1995_s26, %s2429_s26   ;;  %s1930_s25 = sphi %s1993_s25, %s2428_s25   ;;  %s1926_s24 = sphi %s1991_s24, %s2427_s24  }
   0x6   : > { %s2016_s30 = sadd.s32 1, %s1938_s27   ;;  %s181_s8 = sadd.s32 1, %s1934_s26 }
   0x7   : > { %s178_s9 = ssub.s32 %s1938_s27, %s2016_s30  ;;  %p191_p0 = scmp.ne.s32.totalorder %s1934_s26, %s1930_s25 }
   0x8   : > { %p179_p1 = scmp.eq.s32.totalorder %s178_s9, 0  ;;  %p192_p2 = scmp.eq.s32.totalorder %s2012_s28, 1 }
   0x9   : > { %p197_p3 = scmp.ne.s32.totalorder %s1930_s25, %s1926_s24  ;;  %p198_p4 = scmp.eq.s32.totalorder %s1294_s29, 1 }
   0xa   : > { %s2027_s10 = scalar_select %p179_p1, %s1934_s26, %s181_s8  }
   0xb   : > { %p2029_p5 = por %p192_p2, %p191_p0  ;;  %p2033_p6 = por %p198_p4, %p197_p3 }
   0xc   : > { %2414 = sst [smem:[#allocation11_spill]] %s2027_s10  ;;  %p1295_p7 = scmp.ge.s32.totalorder %s1938_s27, 1 }
   0xd   : > { %s2415_s11 = scalar_select %p2029_p5, 1, 0 }
   0xe   : > { %s2416_s12 = scalar_select %p2033_p6, 1, 0 }
   0xf   : > { %p205_p8 = scmp.lt.s32.totalorder %s1938_s27, 3  ;;  %p2411_p9 = scmp.eq.s32.totalorder %s2012_s28, 0 }
  0x10   : > { %s1940_s14 = smov [#allocation2]   ;;  %s1941_s17 = smov [#allocation5]  }
  0x11   : > { %p2040_p10 = pnand %p1295_p7, %p205_p8  ;;  %s220_s15 = sshll.u32 %s1940_s14, 4  ;;  %s221_s15 = int_to_ptr.vmem [resolvable:$true] %s220_s15 }
  0x12   : > { %s236_s18 = sshll.u32 %s1941_s17, 4  ;;  %s1812_s21 = scalar_lea.hbm %s2405_s2, 256  ;;  %s2052_s18 = int_to_ptr.vmem [resolvable:$true] %s236_s18 }
  0x13   : > { %s2417_s13 = scalar_select %p2040_p10, 1, 0 }
  0x14   : > { %p1703_p11 = pneg %p2040_p10  ;;  %p1813_p13 = scmp.ne.s32.totalorder %s2405_s2, %s1812_s21 }
  0x15   : > { %p1819_p3 = scmp.lt.u32.totalorder %s1812_s21, %s2405_s2 }
  0x16   : > { %p2048_p12 = pnand %p2411_p9, %p1703_p11 }
  0x18   : > { %p1814_p0 = pneg %p2048_p12 }
  0x1a   : > { %p1815_p1 = pnand %p1814_p0, %p1813_p13 }
  0x1c   : > { %p1816_p2 = pneg %p1815_p1 }
  0x1e   : > { %p1821_p4 = pnand %p1819_p3, %p1816_p2 }
  0x20   : > { %1824 = shalt.err (!%p1821_p4)
}
  0x21   : > { %s1825_s9 = scalar_lea.vmem %s221_s15, 256  ;;  %p1833_p9 = scmp.lt.s32.totalorder %s221_s15, %s221_s15 }
  0x22   : > { %p1826_p7 = scmp.ne.s32.totalorder %s221_s15, %s1825_s9  ;;  %p1834_p6 = scmp.lt.s32.totalorder %s1825_s9, %s1825_s9 }
  0x24   : > { %p1828_p8 = pnand %p1826_p7, %p1814_p0  ;;  %p1835_p5 = por %p1834_p6, %p1833_p9 }
  0x26   : > { %p1829_p11 = pneg %p1828_p8 }
  0x28   : > { %p1836_p10 = pnand %p1835_p5, %p1829_p11 }
  0x2a   : > { %1839 = shalt.err (!%p1836_p10)
}
  0x2b   : > { %s1942_s14 = smov 128   ;;  %s1943_s17 = smov 8  }
  0x2c   : > { %1706 = dma.hbm_to_vmem [thread:$0]  (!%p2048_p12), %s2405_s2, 256, %s221_s15, [#allocation3], %s1942_s14, %s1942_s14, %s1943_s17  }
  0x2d   : > { %s1840_s23 = scalar_lea.hbm %s2407_s4, 256 }
  0x2e   : > { %p1841_p13 = scmp.ne.s32.totalorder %s2407_s4, %s1840_s23  ;;  %p1847_p9 = scmp.lt.u32.totalorder %s1840_s23, %s2407_s4 }
  0x30   : > { %p1843_p5 = pnand %p1841_p13, %p1814_p0 }
  0x32   : > { %p1844_p6 = pneg %p1843_p5 }
  0x34   : > { %p1849_p10 = pnand %p1847_p9, %p1844_p6 }
  0x36   : > { %1852 = shalt.err (!%p1849_p10)
}
  0x37   : > { %s1853_s15 = scalar_lea.vmem %s2052_s18, 256  ;;  %p1861_p4 = scmp.lt.s32.totalorder %s2052_s18, %s2052_s18 }
  0x38   : > { %p1854_p1 = scmp.ne.s32.totalorder %s2052_s18, %s1853_s15  ;;  %p1862_p7 = scmp.lt.s32.totalorder %s1853_s15, %s1853_s15 }
  0x3a   : > { %p1856_p2 = pnand %p1854_p1, %p1814_p0  ;;  %p1863_p8 = por %p1862_p7, %p1861_p4 }
  0x3c   : > { %p1857_p3 = pneg %p1856_p2 }
  0x3e   : > { %p1864_p11 = pnand %p1863_p8, %p1857_p3 }
  0x40   : > { %1867 = shalt.err (!%p1864_p11)
}
  0x41   : > { %1709 = dma.hbm_to_vmem [thread:$0]  (!%p2048_p12), %s2407_s4, 256, %s2052_s18, [#allocation6], %s1942_s14, %s1942_s14, %s1943_s17  }
  0x42   : > { %p2419_p13 = scmp.ne.s32.totalorder %s2417_s13, 0 }
  0x43   : > { %p2420_p5 = scmp.eq.s32.totalorder (!%p2419_p13), %s2012_s28, 0 }
  0x44   : > { %268 = sbr.rel (%p2419_p13) target bundleno = 585 (0x249), region = 48 }
  0x4b   : > { %1913 = dma.done.wait (%p2420_p5), [#allocation3], 256   ;;  %p2421_p0 = pmov %p2420_p5 }
  0x4d   : > { %1915 = vsyncadd (%p2421_p0), [#allocation3], 4294967040  ;;  %p2422_p6 = pmov %p2421_p0 }
  0x4e   : > { %p2423_p9 = pmov %p2421_p0 }
  0x4f   : > { %1917 = dma.done.wait (%p2422_p6), [#allocation6], 256  }
  0x50   : > { %1919 = vsyncadd (%p2423_p9), [#allocation6], 4294967040  ;;  %s1303_s16 = sshll.u32 %s2012_s28, 2  ;;  %v1944_v0 = vmov 0.0   ;;  %v650_v13 = vld [vmem:[%s2408_s5] sm:$0xff]  ;;  %v651_v14 = vld [vmem:[%s2408_s5 + $0x8] sm:$0xff] }
  0x51   : > { %p306_p10 = scmp.lt.s32.totalorder %s1303_s16, 7  ;;  %394 = vmatprep.mubr.f32.mxu0 %v1944_v0  ;;  %471 = vmatprep.mubr.f32.mxu1 %v1944_v0  ;;  %v321_v15 = vld [vmem:[%s2404_s1] sm:$0xff]  ;;  %vm323_vm0 = vcmask 130048   ;;  %v2148_v16 = vpack.c.bf16 %v651_v14, %v650_v13  ;;  %v322_v17 = vld [vmem:[%s2404_s1 + $0x8] sm:$0xff]  ;;  %v652_v18 = vld [vmem:[%s2408_s5 + $0x10] sm:$0xff]  ;;  %v1945_v41 = vmov 1  }
  0x52   : > { %v653_v19 = vld [vmem:[%s2408_s5 + $0x18] sm:$0xff]  ;;  %v484_v20 = vld [vmem:[#allocation2] sm:$0xff]  ;;  %v655_v23 = vld [vmem:[%s2408_s5 + $0x28] sm:$0xff]  ;;  %1762 = vset.pattern.permute.xlu1 %v1945_v41  ;;  %v1946_v42 = vmov 0   ;;  %s302_s18 = sand.u32 1, %s1930_s25   ;;  %s1336_s23 = sshll.u32 %s2012_s28, 10 }
  0x53   : > { %s2432_s16 = smov (!%p306_p10, %s1303_s16), 7  ;;  %v2165_v21 = vpack.c.bf16 %v653_v19, %v652_v18  ;;  %v654_v22 = vld [vmem:[%s2408_s5 + $0x20] sm:$0xff]  ;;  %v485_v24 = vld [vmem:[#allocation2 + $0x8] sm:$0xff]  ;;  %v656_v26 = vld [vmem:[%s2408_s5 + $0x30] sm:$0xff]  ;;  %1761 = vset.pattern.permute.xlu0 %v1946_v42  ;;  %s1302_s14 = sshll.u32 %s302_s18, 6 }
  0x54   : > { %s1334_s13 = sshll.u32 %s2432_s16, 4  ;;  %v2178_v25 = vpack.c.bf16 %v655_v23, %v654_v22  ;;  %v657_v27 = vld [vmem:[%s2408_s5 + $0x38] sm:$0xff]  ;;  %v658_v29 = vld [vmem:[%s2408_s5 + $0x40] sm:$0xff]  ;;  %v659_v30 = vld [vmem:[%s2408_s5 + $0x48] sm:$0xff]  ;;  %s2357_s9 = scalar_lea.hbm %s2410_s7, %s1336_s23 }
  0x55   : > { %s310_s17 = scalar_lea.vmem %s2403_s0, %s1334_s13  ;;  %v1577_v28 = vpack.c.bf16 %v657_v27, %v656_v26  ;;  %v1581_v31 = vpack.c.bf16 %v659_v30, %v658_v29  ;;  %v660_v32 = vld [vmem:[%s2408_s5 + $0x50] sm:$0xff]  ;;  %v661_v33 = vld [vmem:[%s2408_s5 + $0x58] sm:$0xff]  ;;  %v662_v35 = vld [vmem:[%s2408_s5 + $0x60] sm:$0xff]  ;;  %v1947_v29 = vmov 2   ;;  %s2362_s15 = scalar_lea.sflag [#allocation4], %s302_s18 }
  0x56   : > { %v2115_v1 = vld [vmem:[%s310_s17 + $0x10] sm:$0xff]  ;;  %v2117_v2 = vld [vmem:[%s310_s17 + $0x18] sm:$0xff]  ;;  %v2125_v6 = vld [vmem:[%s310_s17] sm:$0xff]  ;;  %v1585_v34 = vpack.c.bf16 %v661_v33, %v660_v32  ;;  %p2424_p1 = scmp.ne.s32.totalorder %s2415_s11, 0  ;;  %s1948_s28 = smov [#allocation7]  }
  0x57   : > { %v2119_v3 = vld [vmem:[%s310_s17 + $0x30] sm:$0xff]  ;;  %v1549_v4 = vpack.c.bf16 %v2117_v2, %v2115_v1  ;;  %v2123_v5 = vld [vmem:[%s310_s17 + $0x38] sm:$0xff]  ;;  %v2127_v7 = vld [vmem:[%s310_s17 + $0x8] sm:$0xff]  ;;  %s1872_s19 = sshll.u32 %s1948_s28, 4  ;;  %s1873_s19 = int_to_ptr.vmem [resolvable:$false] %s1872_s19 }
  0x58   : > { %v1553_v8 = vpack.c.bf16 %v2123_v5, %v2119_v3  ;;  %v1551_v9 = vpack.c.bf16 %v2127_v7, %v2125_v6  ;;  %v2133_v10 = vld [vmem:[%s310_s17 + $0x20] sm:$0xff]  ;;  %v2135_v11 = vld [vmem:[%s310_s17 + $0x28] sm:$0xff]  ;;  %v664_v38 = vld [vmem:[%s2408_s5 + $0x70] sm:$0xff]  ;;  %s2315_s17 = scalar_lea.vmem [#allocation7], %s1302_s14  ;;  %s1874_s16 = scalar_lea.vmem %s1873_s19, 2048 }
  0x59   : > { %1550 = vmatprep.subr.bf16.mxu0 %v1549_v4  ;;  %v1555_v12 = vpack.c.bf16 %v2135_v11, %v2133_v10  ;;  %v663_v36 = vld [vmem:[%s2408_s5 + $0x68] sm:$0xff]  ;;  %v665_v39 = vld [vmem:[%s2408_s5 + $0x78] sm:$0xff]  ;;  %v666_v60 = vld [vmem:[%s2409_s6] sm:$0xff]  ;;  %s1210_s22 = sshll.u32 %s2315_s17, 4  ;;  %s2352_s22 = int_to_ptr.vmem [resolvable:$true] %s1210_s22 }
  0x5a   : > { %1554 = vmatprep.subr.bf16.mxu1 %v1553_v8  ;;  %1552 = vmatpush1.bf16.msra.mxu0 %v1551_v9  ;;  %v1589_v37 = vpack.c.bf16 %v663_v36, %v662_v35  ;;  %v1593_v40 = vpack.c.bf16 %v665_v39, %v664_v38  ;;  %v667_v59 = vld [vmem:[%s2409_s6 + $0x8] sm:$0xff]  ;;  %s1868_s10 = scalar_lea.vmem %s2352_s22, 1024  ;;  %p1875_p4 = scmp.lt.s32.totalorder %s2352_s22, %s1873_s19 }
  0x5b   : > { %1556 = vmatpush1.bf16.msra.mxu1 %v1555_v12  ;;  %1558 = vmatprep.subr.bf16.mxu0 %v1549_v4  ;;  %p1869_p12 = scmp.ne.s32.totalorder %s2352_s22, %s1868_s10  ;;  %p1876_p7 = scmp.lt.s32.totalorder %s1874_s16, %s1868_s10 }
  0x5c   : > { %1562 = vmatprep.subr.bf16.mxu1 %v1553_v8 }
  0x5d   : > { %1306 = vmatmul.mubr.msk.f32.vlgmr.msra.gmra.mrb[0].mxu0 %vm323_vm0, %v321_v15  ;;  %p1870_p2 = pnand %p1869_p12, %p2424_p1  ;;  %p1877_p8 = por %p1876_p7, %p1875_p4 }
  0x5e   : > { %1308 = vmatmul.mubr.msk.f32.vlgmr.msra.gmra.mrb[0].mxu1 %vm323_vm0, %v321_v15  ;;  %1560 = vmatpush1.bf16.msra.mxu0 %v1551_v9 }
  0x5f   : > { %400 = vmatprep.mubr.f32.mxu0 %v1944_v0  ;;  %477 = vmatprep.mubr.f32.mxu1 %v1944_v0  ;;  %p1871_p3 = pneg %p1870_p2 }
  0x60   : > { %1564 = vmatpush1.bf16.msra.mxu1 %v1555_v12  ;;  %1566 = vmatprep.subr.bf16.mxu0 %v2148_v16 }
  0x61   : > { %1307 = vmatmul.mubr.msk.f32.gmra.mrb[2].mxu0 %vm323_vm0, %v322_v17  ;;  %1598 = vmatprep.subr.bf16.mxu1 %v2148_v16  ;;  %p1878_p11 = pnand %p1877_p8, %p1871_p3 }
  0x62   : > { %1309 = vmatmul.mubr.msk.f32.gmra.mrb[2].mxu1 %vm323_vm0, %v322_v17  ;;  %556 = vmatprep.mubr.f32.mxu0 %v1944_v0 }
  0x63   : > { %633 = vmatprep.mubr.f32.mxu1 %v1944_v0 }
  0x65   : > { %1310 = vmatmul.mubr.msk.f32.vlgmr.msra.gmra.mrb[4].mxu0 %vm323_vm0, %v484_v20 }
  0x66   : > { %1312 = vmatmul.mubr.msk.f32.vlgmr.msra.gmra.mrb[4].mxu1 %vm323_vm0, %v484_v20  ;;  %1568 = vmatpush3.bf16.msra.mxu0 %v2148_v16 }
  0x67   : > { %1600 = vmatpush3.bf16.msra.mxu1 %v2148_v16  ;;  %1570 = vmatprep.subr.bf16.mxu0 %v2165_v21 }
  0x68   : > { %1602 = vmatprep.subr.bf16.mxu1 %v2165_v21  ;;  %562 = vmatprep.mubr.f32.mxu0 %v1944_v0 }
  0x69   : > { %1311 = vmatmul.mubr.msk.f32.gmra.mrb[6].mxu0 %vm323_vm0, %v485_v24  ;;  %639 = vmatprep.mubr.f32.mxu1 %v1944_v0 }
  0x6a   : > { %1572 = vmatpush3.bf16.msra.mxu0 %v2165_v21  ;;  %1313 = vmatmul.mubr.msk.f32.gmra.mrb[6].mxu1 %vm323_vm0, %v485_v24 }
  0x6b   : > { %1604 = vmatpush3.bf16.msra.mxu1 %v2165_v21  ;;  %1574 = vmatprep.subr.bf16.mxu0 %v2178_v25 }
  0x6c   : > { %1606 = vmatprep.subr.bf16.mxu1 %v2178_v25  ;;  %1441 = vmatprep.mubr.f32.mxu0 %v2125_v6 }
  0x6d   : > { %1476 = vmatprep.mubr.f32.mxu1 %v2115_v1 }
  0x6e   : > { %1576 = vmatpush3.bf16.msra.mxu0 %v2178_v25 }
  0x6f   : > { %1608 = vmatpush3.bf16.msra.mxu1 %v2178_v25  ;;  %1578 = vmatprep.subr.bf16.mxu0 %v1577_v28 }
  0x70   : > { %1610 = vmatprep.subr.bf16.mxu1 %v1577_v28 }
  0x72   : > { %1580 = vmatpush3.bf16.msra.mxu0 %v1577_v28 }
  0x73   : > { %1612 = vmatpush3.bf16.msra.mxu1 %v1577_v28  ;;  %1582 = vmatprep.subr.bf16.mxu0 %v1581_v31 }
  0x74   : > { %1614 = vmatprep.subr.bf16.mxu1 %v1581_v31 }
  0x76   : > { %1584 = vmatpush3.bf16.msra.mxu0 %v1581_v31 }
  0x77   : > { %1616 = vmatpush3.bf16.msra.mxu1 %v1581_v31  ;;  %1586 = vmatprep.subr.bf16.mxu0 %v1585_v34 }
  0x78   : > { %1618 = vmatprep.subr.bf16.mxu1 %v1585_v34 }
  0x7a   : > { %1588 = vmatpush3.bf16.msra.mxu0 %v1585_v34 }
  0x7b   : > { %1620 = vmatpush3.bf16.msra.mxu1 %v1585_v34  ;;  %1590 = vmatprep.subr.bf16.mxu0 %v1589_v37 }
  0x7c   : > { %1622 = vmatprep.subr.bf16.mxu1 %v1589_v37 }
  0x7e   : > { %1592 = vmatpush3.bf16.msra.mxu0 %v1589_v37 }
  0x7f   : > { %1624 = vmatpush3.bf16.msra.mxu1 %v1589_v37  ;;  %1594 = vmatprep.subr.bf16.mxu0 %v1593_v40 }
  0x80   : > { %1626 = vmatprep.subr.bf16.mxu1 %v1593_v40 }
  0x82   : > { %1596 = vmatpush3.bf16.msra.mxu0 %v1593_v40 }
  0x83   : > { %1628 = vmatpush3.bf16.msra.mxu1 %v1593_v40  ;;  %1630 = vmatprep.subr.bf16.mxu0 %v2148_v16 }
  0x84   : > { %1662 = vmatprep.subr.bf16.mxu1 %v2148_v16 }
  0x85   : > { %1442 = vmatmul.mubr.f32.vlgmr.msra.gmra.mrb[8].mxu0 %v2127_v7 }
  0x86   : > { %1477 = vmatmul.mubr.f32.vlgmr.msra.gmra.mrb[8].mxu1 %v2117_v2  ;;  %1632 = vmatpush3.bf16.msra.mxu0 %v2148_v16 }
  0x87   : > { %1664 = vmatpush3.bf16.msra.mxu1 %v2148_v16  ;;  %1634 = vmatprep.subr.bf16.mxu0 %v2165_v21 }
  0x88   : > { %1666 = vmatprep.subr.bf16.mxu1 %v2165_v21  ;;  %1546 = vmatprep.mubr.f32.mxu1 %v2119_v3 }
  0x89   : > { %1511 = vmatprep.mubr.f32.mxu0 %v2133_v10 }
  0x8a   : > { %1636 = vmatpush3.bf16.msra.mxu0 %v2165_v21 }
  0x8b   : > { %1668 = vmatpush3.bf16.msra.mxu1 %v2165_v21  ;;  %1638 = vmatprep.subr.bf16.mxu0 %v2178_v25 }
  0x8c   : > { %1670 = vmatprep.subr.bf16.mxu1 %v2178_v25 }
  0x8e   : > { %1640 = vmatpush3.bf16.msra.mxu0 %v2178_v25 }
  0x8f   : > { %1672 = vmatpush3.bf16.msra.mxu1 %v2178_v25  ;;  %1642 = vmatprep.subr.bf16.mxu0 %v1577_v28 }
  0x90   : > { %1674 = vmatprep.subr.bf16.mxu1 %v1577_v28 }
  0x92   : > { %1644 = vmatpush3.bf16.msra.mxu0 %v1577_v28 }
  0x93   : > { %1676 = vmatpush3.bf16.msra.mxu1 %v1577_v28  ;;  %1646 = vmatprep.subr.bf16.mxu0 %v1581_v31 }
  0x94   : > { %1678 = vmatprep.subr.bf16.mxu1 %v1581_v31 }
  0x96   : > { %1648 = vmatpush3.bf16.msra.mxu0 %v1581_v31 }
  0x97   : > { %1680 = vmatpush3.bf16.msra.mxu1 %v1581_v31  ;;  %1650 = vmatprep.subr.bf16.mxu0 %v1585_v34 }
  0x98   : > { %1682 = vmatprep.subr.bf16.mxu1 %v1585_v34 }
  0x9a   : > { %1652 = vmatpush3.bf16.msra.mxu0 %v1585_v34 }
  0x9b   : > { %1684 = vmatpush3.bf16.msra.mxu1 %v1585_v34  ;;  %1654 = vmatprep.subr.bf16.mxu0 %v1589_v37 }
  0x9c   : > { %1686 = vmatprep.subr.bf16.mxu1 %v1589_v37 }
  0x9e   : > { %1656 = vmatpush3.bf16.msra.mxu0 %v1589_v37 }
  0x9f   : > { %1688 = vmatpush3.bf16.msra.mxu1 %v1589_v37  ;;  %1658 = vmatprep.subr.bf16.mxu0 %v1593_v40 }
  0xa0   : > { %1690 = vmatprep.subr.bf16.mxu1 %v1593_v40 }
  0xa2   : > { %1660 = vmatpush3.bf16.msra.mxu0 %v1593_v40 }
  0xa3   : > { %1692 = vmatpush3.bf16.msra.mxu1 %v1593_v40 }
  0xa5   : > { %1512 = vmatmul.mubr.f32.vlgmr.msra.gmra.mrb[10].mxu0 %v2135_v11 }
  0xa6   : > { %1547 = vmatmul.mubr.f32.vlgmr.msra.gmra.mrb[10].mxu1 %v2123_v5 }
 0x130   : > { %v2241_v43 = vpop.f32.mrb[0].mxu0 }
 0x131   : > { %v2243_v44 = vpop.f32.mrb[1].mxu0  ;;  %v2245_v45 = vpop.f32.mrb[0].mxu1 }
 0x132   : > { %v2247_v46 = vpop.f32.mrb[1].mxu1 }
 0x134   : > { %v2249_v47 = vpop.f32.mrb[2].mxu0 }
 0x135   : > { %v2251_v48 = vpop.f32.mrb[3].mxu0  ;;  %v2253_v49 = vpop.f32.mrb[2].mxu1 }
 0x136   : > { %v2255_v50 = vpop.f32.mrb[3].mxu1 }
 0x138   : > { %v2257_v51 = vpop.f32.mrb[4].mxu0 }
 0x139   : > { %v2259_v52 = vpop.f32.mrb[5].mxu0  ;;  %v2261_v53 = vpop.f32.mrb[4].mxu1 }
 0x13a   : > { %v2263_v54 = vpop.f32.mrb[5].mxu1 }
 0x13c   : > { %v2265_v55 = vpop.f32.mrb[6].mxu0 }
 0x13d   : > { %v2267_v56 = vpop.f32.mrb[7].mxu0  ;;  %v2269_v57 = vpop.f32.mrb[6].mxu1 }
 0x13e   : > { %v2271_v58 = vpop.f32.mrb[7].mxu1 }
 0x158   : > { %v1443_v61 = vpop.f32.mrb[8].mxu0 }
 0x159   : > { %v740_v62 = vadd.f32 %v1443_v61, %v667_v59  ;;  %v734_v63 = vpop.f32.mrb[9].mxu0  ;;  %v1478_v0 = vpop.f32.mrb[8].mxu1 }
 0x15a   : > { %v735_v4 = vadd.f32 %v734_v63, %v666_v60  ;;  %v871_v8 = vadd.f32 %v1478_v0, %v667_v59  ;;  %v865_v9 = vpop.f32.mrb[9].mxu1 }
 0x15b   : > { %v1315_v12 = vmul.f32 -1.442695, %v740_v62  ;;  %v866_v15 = vadd.f32 %v865_v9, %v666_v60 }
 0x15c   : > { %v1317_v13 = vmul.f32 -1.442695, %v871_v8  ;;  %v1314_v14 = vmul.f32 -1.442695, %v735_v4 }
 0x15d   : > { %1780 = vpow2.f32 %v1315_v12  ;;  %v1316_v16 = vmul.f32 -1.442695, %v866_v15 }
 0x15e   : > { %1782 = vpow2.f32 %v1317_v13 }
 0x15f   : > { %1784 = vpow2.f32 %v1314_v14 }
 0x160   : > { %1786 = vpow2.f32 %v1316_v16  ;;  %v2299_v16 = vld [vmem:[%s2406_s3 + $0x8] sm:$0xff] }
 0x167   : > { %v1781_v17 = vpop.eup %1780 }
 0x168   : > { %v750_v18 = vadd.f32 1.0, %v1781_v17  ;;  %v1783_v19 = vpop.eup %1782  ;;  %v2301_v17 = vld [vmem:[#allocation5 + $0x8] sm:$0xff] }
 0x169   : > { %v881_v20 = vadd.f32 1.0, %v1783_v19  ;;  %v1785_v21 = vpop.eup %1784 }
 0x16a   : > { %1788 = vrcp.f32 %v750_v18  ;;  %v749_v22 = vadd.f32 1.0, %v1785_v21  ;;  %v1787_v23 = vpop.eup %1786  ;;  %v770_v18 = vadd.f32 %v2301_v17, %v2265_v55 }
 0x16b   : > { %1790 = vrcp.f32 %v881_v20  ;;  %v880_v26 = vadd.f32 1.0, %v1787_v23 }
 0x16c   : > { %1792 = vrcp.f32 %v749_v22 }
 0x16d   : > { %1794 = vrcp.f32 %v880_v26 }
 0x174   : > { %v1789_v24 = vpop.eup %1788 }
 0x175   : > { %776 = vperm.xlu1 %1762, %v1789_v24   ;;  %764 = vperm.xlu0 %1761, %v1789_v24   ;;  %v1791_v25 = vpop.eup %1790 }
 0x176   : > { %v1793_v35 = vpop.eup %1792 }
 0x177   : > { %v1795_v40 = vpop.eup %1794 }
 0x178   : > { %v1513_v27 = vpop.f32.mrb[10].mxu0 }
 0x179   : > { %v1548_v28 = vpop.f32.mrb[10].mxu1  ;;  %1763 = vset.pattern.permute.xlu1 %v1947_v29  ;;  %895 = vperm.xlu0 %1761, %v1791_v25   ;;  %v1003_v30 = vadd.f32 %v1513_v27, %v667_v59  ;;  %v997_v31 = vpop.f32.mrb[11].mxu0  ;;  %v887_v27 = vadd.f32 %v2299_v16, %v2251_v48  ;;  %v648_v48 = vld [vmem:[#allocation5] sm:$0xff] }
 0x17a   : > { %v1135_v32 = vadd.f32 %v1548_v28, %v667_v59  ;;  %786 = vperm.xlu1 %1763, %v1789_v24   ;;  %v1129_v33 = vpop.f32.mrb[11].mxu1  ;;  %v998_v37 = vadd.f32 %v997_v31, %v666_v60 }
 0x17b   : > { %v1321_v34 = vmul.f32 -1.442695, %v1003_v30  ;;  %v1130_v39 = vadd.f32 %v1129_v33, %v666_v60  ;;  %v646_v33 = vld [vmem:[%s2406_s3] sm:$0xff] }
 0x17c   : > { %v1325_v36 = vmul.f32 -1.442695, %v1135_v32  ;;  %v1320_v38 = vmul.f32 -1.442695, %v998_v37 }
 0x17d   : > { %1796 = vpow2.f32 %v1321_v34  ;;  %759 = vperm.xlu0 %1761, %v1793_v35   ;;  %v1324_v59 = vmul.f32 -1.442695, %v1130_v39 }
 0x17e   : > { %1798 = vpow2.f32 %v1325_v36  ;;  %1764 = vset.pattern.permute.xlu1 %v1945_v41  ;;  %v769_v36 = vadd.f32 %v648_v48, %v2257_v51 }
 0x17f   : > { %907 = vperm.xlu1 %1764, %v1791_v25   ;;  %1800 = vpow2.f32 %v1320_v38 }
 0x180   : > { %1802 = vpow2.f32 %v1324_v59 }
 0x181   : > { %1767 = vset.pattern.permute.xlu0 %v1947_v29 }
 0x182   : > { %782 = vperm.xlu0 %1767, %v1793_v35  }
 0x183   : > { %1765 = vset.pattern.permute.xlu1 %v1947_v29 }
 0x184   : > { %917 = vperm.xlu1 %1765, %v1791_v25  }
 0x186   : > { %913 = vperm.xlu0 %1767, %v1795_v40  }
 0x187   : > { %v1797_v61 = vpop.eup %1796 }
 0x188   : > { %v1799_v62 = vpop.eup %1798  ;;  %v1013_v63 = vadd.f32 1.0, %v1797_v61  ;;  %1766 = vset.pattern.permute.xlu1 %v1945_v41 }
 0x189   : > { %v1145_v0 = vadd.f32 1.0, %v1799_v62  ;;  %772 = vperm.xlu1 %1766, %v1793_v35   ;;  %v1801_v60 = vpop.eup %1800  ;;  %v755_v35 = vadd.f32 %v646_v33, %v2241_v43  ;;  %v900_v43 = vadd.f32 %v648_v48, %v2259_v52 }
 0x18a   : > { %1804 = vrcp.f32 %v1013_v63  ;;  %1772 = vset.pattern.permute.xlu0 %v1946_v42  ;;  %v1012_v4 = vadd.f32 1.0, %v1801_v60  ;;  %v1803_v8 = vpop.eup %1802 }
 0x18b   : > { %1806 = vrcp.f32 %v1145_v0  ;;  %v1144_v13 = vadd.f32 1.0, %v1803_v8 }
 0x18c   : > { %1808 = vrcp.f32 %v1012_v4 }
 0x18d   : > { %1768 = vset.pattern.permute.xlu1 %v1946_v42  ;;  %1810 = vrcp.f32 %v1144_v13 }
 0x18e   : > { %890 = vperm.xlu1 %1768, %v1795_v40  }
 0x192   : > { %1769 = vset.pattern.permute.xlu1 %v1945_v41 }
 0x193   : > { %903 = vperm.xlu1 %1769, %v1795_v40  }
 0x194   : > { %v1805_v9 = vpop.eup %1804 }
 0x195   : > { %v1807_v12 = vpop.eup %1806 }
 0x196   : > { %1159 = vperm.xlu0 %1772, %v1807_v12   ;;  %v1809_v14 = vpop.eup %1808 }
 0x197   : > { %1770 = vset.pattern.permute.xlu1 %v1946_v42  ;;  %v1811_v15 = vpop.eup %1810 }
 0x198   : > { %1027 = vperm.xlu1 %1770, %v1805_v9  }
 0x19a   : > { %1773 = vset.pattern.permute.xlu0 %v1947_v29 }
 0x19b   : > { %1049 = vperm.xlu0 %1773, %v1805_v9  }
 0x19c   : > { %1771 = vset.pattern.permute.xlu1 %v1945_v41 }
 0x19d   : > { %1039 = vperm.xlu1 %1771, %v1805_v9  }
 0x19f   : > { %1774 = vset.pattern.permute.xlu0 %v1946_v42 }
 0x1a0   : > { %1022 = vperm.xlu0 %1774, %v1809_v14  }
 0x1a1   : > { %1171 = vperm.xlu1 %1771, %v1807_v12  }
 0x1a4   : > { %1775 = vset.pattern.permute.xlu0 %v1945_v41 }
 0x1a5   : > { %1035 = vperm.xlu0 %1775, %v1809_v14   ;;  %1776 = vset.pattern.permute.xlu1 %v1946_v42  ;;  %v756_v42 = vadd.f32 %v2299_v16, %v2249_v47  ;;  %v901_v47 = vadd.f32 %v2301_v17, %v2267_v56 }
 0x1a6   : > { %1154 = vperm.xlu1 %1776, %v1811_v15  }
 0x1a9   : > { %1779 = vset.pattern.permute.xlu0 %v1947_v29 }
 0x1aa   : > { %1181 = vperm.xlu0 %1779, %v1807_v12   ;;  %1777 = vset.pattern.permute.xlu1 %v1945_v41 }
 0x1ab   : > { %1167 = vperm.xlu1 %1777, %v1811_v15  }
 0x1af   : > { %1778 = vset.pattern.permute.xlu1 %v1947_v29 }
 0x1b0   : > { %1045 = vperm.xlu1 %1778, %v1809_v14  }
 0x1b4   : > { %1177 = vperm.xlu1 %1778, %v1811_v15  }
 0x1f4   : > { %v777_v41 = vpop.permute.xlu1 %776  ;;  %v765_v19 = vpop.permute.xlu0 %764 }
 0x1f5   : > { %v780_v20 = vmul.f32 %v777_v41, %v770_v18  ;;  %v768_v21 = vmul.f32 %v765_v19, %v756_v42  ;;  %v1019_v41 = vadd.f32 %v2299_v16, %v2253_v49 }
 0x1f7   : > { %v792_v22 = vadd.f32 %v780_v20, %v768_v21  ;;  %v1165_v21 = vadd.f32 %v2301_v17, %v2271_v58 }
 0x1f8   : > { %v896_v25 = vpop.permute.xlu0 %895 }
 0x1f9   : > { %v787_v23 = vpop.permute.xlu1 %786  ;;  %v899_v29 = vmul.f32 %v896_v25, %v887_v27 }
 0x1fa   : > { %v790_v24 = vmul.f32 %v787_v23, %v2127_v7 }
 0x1fc   : > { %v794_v26 = vadd.f32 %v792_v22, %v790_v24  ;;  %v760_v32 = vpop.permute.xlu0 %759 }
 0x1fd   : > { %v767_v40 = vmul.f32 %v760_v32, %v755_v35 }
 0x1fe   : > { %v796_v55 = vmax.f32 %v794_v26, 0.0  ;;  %v908_v28 = vpop.permute.xlu1 %907 }
 0x1ff   : > { %v911_v30 = vmul.f32 %v908_v28, %v901_v47  ;;  %v1032_v47 = vadd.f32 %v648_v48, %v2261_v53 }
 0x200   : > { %798 = vst [vmem:[%s2315_s17 + $0x8] sm:$0xff] %v796_v55 }
 0x201   : > { %v923_v31 = vadd.f32 %v911_v30, %v899_v29  ;;  %v783_v37 = vpop.permute.xlu0 %782  ;;  %v1164_v30 = vadd.f32 %v648_v48, %v2263_v54 }
 0x202   : > { %v789_v61 = vmul.f32 %v783_v37, %v2125_v6 }
 0x203   : > { %v918_v7 = vpop.permute.xlu1 %917 }
 0x204   : > { %v921_v34 = vmul.f32 %v918_v7, %v2117_v2  ;;  %v886_v2 = vadd.f32 %v646_v33, %v2243_v44  ;;  %v1033_v44 = vadd.f32 %v2301_v17, %v2269_v57  ;;  %v1018_v57 = vadd.f32 %v646_v33, %v2245_v45 }
 0x205   : > { %v914_v4 = vpop.permute.xlu0 %913 }
 0x206   : > { %v925_v56 = vadd.f32 %v923_v31, %v921_v34  ;;  %v920_v12 = vmul.f32 %v914_v4, %v2115_v1  ;;  %v1151_v1 = vadd.f32 %v2299_v16, %v2255_v50 }
 0x208   : > { %v927_v38 = vmax.f32 %v925_v56, 0.0  ;;  %v773_v39 = vpop.permute.xlu1 %772 }
 0x209   : > { %v779_v59 = vmul.f32 %v773_v39, %v769_v36 }
 0x20a   : > { %1319 = vst [vmem:[%s2315_s17 + $0x18] sm:$0xff] %v927_v38 }
 0x20b   : > { %v791_v62 = vadd.f32 %v779_v59, %v767_v40 }
 0x20d   : > { %v793_v63 = vadd.f32 %v791_v62, %v789_v61  ;;  %v891_v0 = vpop.permute.xlu1 %890 }
 0x20e   : > { %v898_v8 = vmul.f32 %v891_v0, %v886_v2 }
 0x20f   : > { %v795_v60 = vmax.f32 %v793_v63, 0.0 }
 0x211   : > { %797 = vst [vmem:[%s2315_s17] sm:$0xff] %v795_v60 }
 0x212   : > { %v904_v51 = vpop.permute.xlu1 %903 }
 0x213   : > { %v910_v9 = vmul.f32 %v904_v51, %v900_v43 }
 0x215   : > { %v922_v13 = vadd.f32 %v910_v9, %v898_v8  ;;  %v1160_v14 = vpop.permute.xlu0 %1159 }
 0x216   : > { %v1163_v49 = vmul.f32 %v1160_v14, %v1151_v1 }
 0x217   : > { %v924_v15 = vadd.f32 %v922_v13, %v920_v12  ;;  %v1028_v6 = vpop.permute.xlu1 %1027 }
 0x218   : > { %v1031_v19 = vmul.f32 %v1028_v6, %v1019_v41 }
 0x219   : > { %v926_v42 = vmax.f32 %v924_v15, 0.0 }
 0x21a   : > { %v1050_v18 = vpop.permute.xlu0 %1049 }
 0x21b   : > { %1318 = vst [vmem:[%s2315_s17 + $0x10] sm:$0xff] %v926_v42  ;;  %v1053_v22 = vmul.f32 %v1050_v18, %v2135_v11  ;;  %v1150_v11 = vadd.f32 %v646_v33, %v2247_v46 }
 0x21c   : > { %v1040_v52 = vpop.permute.xlu1 %1039 }
 0x21d   : > { %v1043_v20 = vmul.f32 %v1040_v52, %v1033_v44 }
 0x21f   : > { %v1055_v23 = vadd.f32 %v1043_v20, %v1031_v19  ;;  %v1023_v24 = vpop.permute.xlu0 %1022 }
 0x220   : > { %v1172_v25 = vpop.permute.xlu1 %1171  ;;  %v1030_v50 = vmul.f32 %v1023_v24, %v1018_v57 }
 0x221   : > { %v1057_v26 = vadd.f32 %v1055_v23, %v1053_v22  ;;  %v1175_v27 = vmul.f32 %v1172_v25, %v1165_v21 }
 0x223   : > { %v1059_v55 = vmax.f32 %v1057_v26, 0.0  ;;  %v1187_v28 = vadd.f32 %v1175_v27, %v1163_v49 }
 0x224   : > { %v1036_v29 = vpop.permute.xlu0 %1035 }
 0x225   : > { %1323 = vst [vmem:[%s2315_s17 + $0x28] sm:$0xff] %v1059_v55  ;;  %v1042_v16 = vmul.f32 %v1036_v29, %v1032_v47  ;;  %v1155_v58 = vpop.permute.xlu1 %1154 }
 0x226   : > { %v1162_v32 = vmul.f32 %v1155_v58, %v1150_v11 }
 0x227   : > { %v1054_v17 = vadd.f32 %v1042_v16, %v1030_v50 }
 0x229   : > { %v1182_v31 = vpop.permute.xlu0 %1181 }
 0x22a   : > { %v1185_v45 = vmul.f32 %v1182_v31, %v2123_v5  ;;  %v1168_v53 = vpop.permute.xlu1 %1167 }
 0x22b   : > { %v1174_v7 = vmul.f32 %v1168_v53, %v1164_v30 }
 0x22c   : > { %v1189_v34 = vadd.f32 %v1187_v28, %v1185_v45 }
 0x22d   : > { %v1186_v56 = vadd.f32 %v1174_v7, %v1162_v32 }
 0x22e   : > { %v1191_v35 = vmax.f32 %v1189_v34, 0.0 }
 0x22f   : > { %v1046_v36 = vpop.permute.xlu1 %1045 }
 0x230   : > { %1327 = vst [vmem:[%s2315_s17 + $0x38] sm:$0xff] %v1191_v35  ;;  %v1052_v37 = vmul.f32 %v1046_v36, %v2133_v10 }
 0x232   : > { %v1056_v46 = vadd.f32 %v1054_v17, %v1052_v37 }
 0x233   : > { %v1178_v54 = vpop.permute.xlu1 %1177 }
 0x234   : > { %v1058_v33 = vmax.f32 %v1056_v46, 0.0  ;;  %v1184_v5 = vmul.f32 %v1178_v54, %v2119_v3 }
 0x236   : > { %1322 = vst [vmem:[%s2315_s17 + $0x20] sm:$0xff] %v1058_v33  ;;  %v1188_v48 = vadd.f32 %v1186_v56, %v1184_v5 }
 0x238   : > { %v1190_v38 = vmax.f32 %v1188_v48, 0.0 }
 0x23a   : > { %1326 = vst [vmem:[%s2315_s17 + $0x30] sm:$0xff] %v1190_v38 }
 0x23b   : > { %1881 = shalt.err (!%p1878_p11)
}
 0x23c   : > { %s1882_s13 = scalar_lea.hbm %s2357_s9, 1024  ;;  %s1886_s17 = scalar_lea.hbm %s2410_s7, 2048 }
 0x23d   : > { %p1883_p13 = scmp.ne.s32.totalorder %s2357_s9, %s1882_s13  ;;  %p1887_p6 = scmp.lt.u32.totalorder %s2357_s9, %s2410_s7 }
 0x23e   : > { %p1888_p9 = scmp.lt.u32.totalorder %s1886_s17, %s1882_s13  ;;  %p1890_p12 = scmp.lt.u32.totalorder %s1882_s13, %s2357_s9 }
 0x23f   : > { %p1884_p5 = pnand %p1883_p13, %p2424_p1 }
 0x240   : > { %p1889_p10 = por %p1888_p9, %p1887_p6 }
 0x241   : > { %p1885_p0 = pneg %p1884_p5 }
 0x242   : > { %p1891_p2 = por %p1890_p12, %p1889_p10 }
 0x244   : > { %p1892_p3 = pnand %p1891_p2, %p1885_p0 }
 0x246   : > { %1895 = shalt.err (!%p1892_p3)
}
 0x247   : > { %s1949_s23 = smov 128   ;;  %s1950_s29 = smov 8  }
 0x248   : > { %1701 = dma.vmem_to_hbm [thread:$0]  (%p2424_p1), %s2352_s22, 1024, %s2357_s9, %s2362_s15, %s1949_s23, %s1949_s23, %s1950_s29  }
 0x249 PF: > { %p1718_p4 = scmp.ge.s32.totalorder %s1938_s27, 2  ;;  %s1225_s8 = sand.u32 1, %s1926_s24  }
 0x24a   : > { %p2425_p7 = scmp.ne.s32.totalorder %s2416_s12, 0  ;;  %s1226_s10 = scalar_lea.sflag [#allocation4], %s1225_s8 }
 0x24c   : > { %p1711_p8 = pnand %p1718_p4, %p2425_p7 }
 0x24e   : > { %1921 = dma.done.wait (!%p1711_p8), %s1226_s10, 1024  }
 0x24f   : > { %1923 = vsyncadd (!%p1711_p8), %s1226_s10, 4294966272  ;;  %s2426_s28 = sld [smem:[#allocation11_spill]]  ;;  %p19_p11 = scmp.ge.s32.totalorder %s2016_s30, 4  }
 0x250   : > { %s2427_s24 = smov %s1930_s25  ;;  %s2428_s25 = smov %s1934_s26 }
 0x251   : > { %s2430_s27 = smov %s2016_s30  ;;  %21 = sbr.rel (!%p19_p11) target bundleno = 5 (0x5), region = 95 }
 0x255   : > { %s2429_s26 = smov %s2426_s28 }
 0x258   :  { %1231 = vsyncpa [#allocation3], 1 }
 0x259   :  { %1233 = vsyncpa [#allocation3 + $0x1], 1 }
 0x25a   :  { %1234 = vsyncpa [#allocation6], 1 }
 0x25b   :  { %1235 = vsyncpa [#allocation4], 1 }
 0x25c   :  { %1237 = vsyncpa [#allocation4 + $0x1], 1 }

</bundles_post_ra>
